<compile_context>
chip_gen: v6e
topology: v6e:2x2x1
jax: 0.10.0
libtpu: 0.0.40
codegen_flags: <defaults>
</compile_context>

<pallas_src>
import functools

import jax
import jax.numpy as jnp
from jax.experimental import pallas as pl
from jax.experimental.pallas import tpu as pltpu


GATE_PAD = 128   # each gate's output columns are padded to one full vreg of lanes


# ---------------------------------------------------------------------------
# Kernel
# ---------------------------------------------------------------------------
def decoder_kernel(output_dim, hid_dim, batch, gate_pad,
                   idx_ref, ctx_ref, h0_ref,
                   wx0o_ref, whh_ref, wx1o_ref,
                   b0_ref, b1_ref, b_out_ref,
                   pred_ref, hidden_ref):
    O, H, B, GP = output_dim, hid_dim, batch, gate_pad
    f32 = jnp.float32

    # ---- build x = [one_hot | ctx] for both timesteps (no HBM intermediates) ----
    idx = idx_ref[...]                                               # (B, 1) int32
    lane = jax.lax.broadcasted_iota(jnp.int32, (B, O), 1)
    one_hot = (lane == idx).astype(f32)                              # (B, O)
    one_hot2 = jnp.concatenate([one_hot, one_hot], axis=0)           # (2B, O)
    x_both = jnp.concatenate([one_hot2, ctx_ref[...]], axis=1)       # (2B, O+H)

    # ---- biases (gate-major; r/z biases pre-summed) ------------------------------
    b0_r, b0_z, b0_ni, b0_nh = b0_ref[0], b0_ref[1], b0_ref[2], b0_ref[3]
    b1_r, b1_z, b1_ni, b1_nh = b1_ref[0], b1_ref[1], b1_ref[2], b1_ref[3]

    # ---- matmul #1: layer-0 input projection for BOTH timesteps, fused with the
    #      [one_hot | ctx0] part of the output Linear (columns 3*GP .. 3*GP+O) -----
    big0 = jnp.dot(x_both, wx0o_ref[...], preferred_element_type=f32)  # (2B, 3GP+O)
    pred_x = big0[0:B, 3 * GP:3 * GP + O]                               # (B, O)

    h_all = h0_ref[...]                      # (2B, H): rows [0,B) layer-0, [B,2B) layer-1
    h_l0 = h_all[0:B, :]
    h_l1 = h_all[B:2 * B, :]

    def gru(gi_r, gi_z, gi_n, gh_r, gh_z, gh_n, h, b_r, b_z, b_ni, b_nh):
        # PyTorch GRU cell with pre-summed r/z biases:
        #   r = sig(Wx_r + Wh_r h + b_r);  z = sig(Wx_z + Wh_z h + b_z)
        #   n = tanh(Wx_n + b_in + r * (Wh_n h + b_hn));  h' = (1-z)*n + z*h
        r = jax.nn.sigmoid(gi_r + gh_r + b_r)
        z = jax.nn.sigmoid(gi_z + gh_z + b_z)
        n = jnp.tanh(gi_n + b_ni + r * (gh_n + b_nh))
        return (1.0 - z) * n + z * h

    pred_h = None
    for t in range(2):                                   # 2 fixed timesteps, unrolled
        lo = t * B
        # matmul: hidden projections of BOTH layers from the OLD h values, one pass.
        gh = jnp.dot(h_all, whh_ref[...], preferred_element_type=f32)   # (2B, 6*GP)

        # layer 0
        h_l0 = gru(big0[lo:lo + B, 0:H], big0[lo:lo + B, GP:GP + H],
                   big0[lo:lo + B, 2 * GP:2 * GP + H],
                   gh[0:B, 0:H], gh[0:B, GP:GP + H], gh[0:B, 2 * GP:2 * GP + H],
                   h_l0, b0_r, b0_z, b0_ni, b0_nh)

        # matmul: layer-1 input projection from the NEW h_l0, fused with the hidden
        # part of the output Linear (those columns are only consumed at t == 1).
        big1 = jnp.dot(h_l0, wx1o_ref[...], preferred_element_type=f32)  # (B, 3GP+O)

        # layer 1 (its gh comes from the combined matmul above, i.e. the OLD h_l1)
        h_l1 = gru(big1[:, 0:H], big1[:, GP:GP + H], big1[:, 2 * GP:2 * GP + H],
                   gh[B:2 * B, 3 * GP:3 * GP + H], gh[B:2 * B, 4 * GP:4 * GP + H],
                   gh[B:2 * B, 5 * GP:5 * GP + H],
                   h_l1, b1_r, b1_z, b1_ni, b1_nh)

        h_all = jnp.concatenate([h_l0, h_l1], axis=0)                    # (2B, H)
        pred_h = big1[:, 3 * GP:3 * GP + O]                              # (B, O)

    pred_ref[...] = (pred_x + pred_h + b_out_ref[...]).astype(pred_ref.dtype)
    hidden_ref[...] = h_all.astype(hidden_ref.dtype)     # written AFTER h0_ref was read


# ---------------------------------------------------------------------------
# Parameters (PyTorch layout) + one-time re-layout for the kernel
# ---------------------------------------------------------------------------
def init_params(key, output_dim, hid_dim):
    i0 = output_dim + hid_dim
    bound = 1.0 / (hid_dim ** 0.5)

    def u(k, shape):
        return jax.random.uniform(k, shape, jnp.float32, -bound, bound)

    ks = jax.random.split(key, 10)
    return dict(
        w_ih0=u(ks[0], (3 * hid_dim, i0)),
        w_hh0=u(ks[1], (3 * hid_dim, hid_dim)),
        b_ih0=u(ks[2], (1, 3 * hid_dim)),
        b_hh0=u(ks[3], (1, 3 * hid_dim)),
        w_ih1=u(ks[4], (3 * hid_dim, hid_dim)),
        w_hh1=u(ks[5], (3 * hid_dim, hid_dim)),
        b_ih1=u(ks[6], (1, 3 * hid_dim)),
        b_hh1=u(ks[7], (1, 3 * hid_dim)),
        w_out=u(ks[8], (output_dim, output_dim + 2 * hid_dim)),
        b_out=u(ks[9], (1, output_dim)),
    )


def prepare_params(params, output_dim, hid_dim):
    """One-time transform: transpose to (in,out), fuse gates with 128-lane-padded
    gate blocks, fold the output Linear into spare columns, pre-sum r/z biases."""
    O, H, GP = output_dim, hid_dim, GATE_PAD
    w_ih0, w_hh0 = params['w_ih0'], params['w_hh0']          # (3H, O+H), (3H, H)
    w_ih1, w_hh1 = params['w_ih1'], params['w_hh1']          # (3H, H),   (3H, H)
    w_out = params['w_out']                                  # (O, O+2H)

    def place(dst, col0, w_t):
        return dst.at[:, col0:col0 + w_t.shape[1]].set(w_t)

    # Layer-0 input + output-Linear-x fused weight: (O+H, 3*GP + O)
    wx0o = jnp.zeros((O + H, 3 * GP + O), jnp.float32)
    for g in range(3):
        wx0o = place(wx0o, g * GP, w_ih0[g * H:(g + 1) * H, :].T)        # (O+H, H)
    wo_x = jnp.concatenate([w_out[:, :O].T, w_out[:, O + H:].T], axis=0)  # (O+H, O)
    wx0o = place(wx0o, 3 * GP, wo_x)

    # Combined hidden weights for BOTH layers: (H, 6*GP)
    whh = jnp.zeros((H, 6 * GP), jnp.float32)
    for g in range(3):
        whh = place(whh, g * GP, w_hh0[g * H:(g + 1) * H, :].T)
        whh = place(whh, (3 + g) * GP, w_hh1[g * H:(g + 1) * H, :].T)

    # Layer-1 input + output-Linear-h fused weight: (H, 3*GP + O)
    wx1o = jnp.zeros((H, 3 * GP + O), jnp.float32)
    for g in range(3):
        wx1o = place(wx1o, g * GP, w_ih1[g * H:(g + 1) * H, :].T)
    wx1o = place(wx1o, 3 * GP, w_out[:, O:O + H].T)

    def bias_pack(b_ih, b_hh):                # (1,3H),(1,3H) -> (4, 1, H)
        b_ih = b_ih.reshape(3, 1, H)
        b_hh = b_hh.reshape(3, 1, H)
        return jnp.stack([b_ih[0] + b_hh[0],          # r: pre-summed
                          b_ih[1] + b_hh[1],          # z: pre-summed
                          b_ih[2],                    # n: input side
                          b_hh[2]])                   # n: hidden side

    return dict(wx0o=wx0o, whh=whh, wx1o=wx1o,
                b0=bias_pack(params['b_ih0'], params['b_hh0']),
                b1=bias_pack(params['b_ih1'], params['b_hh1']),
                b_out=params['b_out'])


# ---------------------------------------------------------------------------
# Wrapper
# ---------------------------------------------------------------------------
def decoder_forward(prep, input_idx, hidden, context, output_dim, hid_dim):
    """input_idx: (B,) int; hidden: (2, B, H); context: (2, B, H).

    NOTE: `hidden` is donated to the kernel (aliased to the hidden output); do not
    reuse the passed-in buffer after this call -- use the returned hidden instead.
    """
    B, H = input_idx.shape[0], hid_dim
    idx2d = input_idx.astype(jnp.int32).reshape(B, 1)
    ctx2d = context.reshape(2 * B, H)          # free relayout; kernel wants (2B, H)
    h2d = hidden.reshape(2 * B, H)

    kernel = functools.partial(decoder_kernel, output_dim, hid_dim, B, GATE_PAD)
    vmem = pl.BlockSpec(memory_space=pltpu.MemorySpace.VMEM)
    args = (idx2d, ctx2d, h2d,
            prep['wx0o'], prep['whh'], prep['wx1o'],
            prep['b0'], prep['b1'], prep['b_out'])

    pred, h_new = pl.pallas_call(
        kernel,
        out_shape=(jax.ShapeDtypeStruct((B, output_dim), jnp.float32),
                   jax.ShapeDtypeStruct((2 * B, H), jnp.float32)),
        in_specs=[vmem] * len(args),
        out_specs=(vmem, vmem),
        input_output_aliases={2: 1},           # hidden (input) -> hidden (output)
    )(*args)
    return pred, h_new.reshape(2, B, H)


# ---------------------------------------------------------------------------
# Pure-JAX reference (PyTorch-layout params)
# ---------------------------------------------------------------------------
def reference_forward(params, input_idx, hidden, context, output_dim, hid_dim):
    B, H = input_idx.shape[0], hid_dim
    one_hot = jax.nn.one_hot(input_idx, output_dim, dtype=jnp.float32)
    inp = jnp.broadcast_to(one_hot[None], (2, B, output_dim))
    x = jnp.concatenate([inp, context], axis=2)
    h0, h1 = hidden[0], hidden[1]

    def cell(xt, h, w_ih, w_hh, b_ih, b_hh):
        gi = xt @ w_ih.T + b_ih
        gh = h @ w_hh.T + b_hh
        r = jax.nn.sigmoid(gi[:, :H] + gh[:, :H])
        z = jax.nn.sigmoid(gi[:, H:2 * H] + gh[:, H:2 * H])
        n = jnp.tanh(gi[:, 2 * H:] + r * gh[:, 2 * H:])
        return (1.0 - z) * n + z * h

    for t in range(2):
        h0 = cell(x[t], h0, params['w_ih0'], params['w_hh0'],
                  params['b_ih0'], params['b_hh0'])
        h1 = cell(h0, h1, params['w_ih1'], params['w_hh1'],
                  params['b_ih1'], params['b_hh1'])
    out_in = jnp.concatenate([inp[0], h0, context[0]], axis=1)
    pred = out_in @ params['w_out'].T + params['b_out']
    return pred, jnp.stack([h0, h1])


if __name__ == "__main__":
    OUTPUT_DIM, HID_DIM, BATCH = 16, 32, 8     # BATCH a multiple of 8 keeps all
                                               # sublane concats/slices vreg-aligned

    key = jax.random.PRNGKey(0)
    kp, ki, kh, kc = jax.random.split(key, 4)
    params = init_params(kp, OUTPUT_DIM, HID_DIM)
    prep = prepare_params(params, OUTPUT_DIM, HID_DIM)     # one-time weight re-layout
    input_idx = jax.random.randint(ki, (BATCH,), 0, OUTPUT_DIM, dtype=jnp.int32)
    hidden = jax.random.normal(kh, (2, BATCH, HID_DIM), jnp.float32)
    context = jax.random.normal(kc, (2, BATCH, HID_DIM), jnp.float32)

    # Compute the reference BEFORE the kernel (the kernel donates hidden's buffer).
    ref_pred, ref_h = reference_forward(params, input_idx, hidden, context,
                                        OUTPUT_DIM, HID_DIM)
    ref_pred, ref_h = jax.block_until_ready((ref_pred, ref_h))

    pred, h_new = decoder_forward(prep, input_idx, hidden, context,
                                  OUTPUT_DIM, HID_DIM)
    pred, h_new = jax.block_until_ready((pred, h_new))

    assert pred.shape == (BATCH, OUTPUT_DIM)
    assert h_new.shape == (2, BATCH, HID_DIM)
    assert jnp.allclose(pred, ref_pred, atol=1e-4, rtol=1e-4)
    assert jnp.allclose(h_new, ref_h, atol=1e-4, rtol=1e-4)
    print("KERNEL_OK")
</pallas_src>

<mosaic_0001>
module attributes {stable_mosaic.version = 11 : i64} {
  func.func @decoder_kernel(%arg0: memref<8x1xi32, #tpu.memory_space<vmem>>, %arg1: memref<16x32xf32, #tpu.memory_space<vmem>>, %arg2: memref<16x32xf32, #tpu.memory_space<vmem>>, %arg3: memref<48x400xf32, #tpu.memory_space<vmem>>, %arg4: memref<32x768xf32, #tpu.memory_space<vmem>>, %arg5: memref<32x400xf32, #tpu.memory_space<vmem>>, %arg6: memref<4x1x32xf32, #tpu.memory_space<vmem>>, %arg7: memref<4x1x32xf32, #tpu.memory_space<vmem>>, %arg8: memref<1x16xf32, #tpu.memory_space<vmem>>, %arg9: memref<8x16xf32, #tpu.memory_space<vmem>>, %arg10: memref<16x32xf32, #tpu.memory_space<vmem>>) attributes {dimension_semantics = [], scalar_prefetch = 0 : i64, scratch_operands = 0 : i64, tpu.core_type = #tpu.core_type<tc>} {
    %c0 = arith.constant 0 : index
    %c0_0 = arith.constant 0 : index
    %0 = vector.load %arg0[%c0, %c0_0] : memref<8x1xi32, #tpu.memory_space<vmem>>, vector<8x1xi32>
    %1 = tpu.iota {dimensions = array<i32: 1>} : vector<8x16xi32>
    %2 = vector.broadcast %0 : vector<8x1xi32> to vector<8x16xi32>
    %3 = arith.cmpi eq, %1, %2 : vector<8x16xi32>
    %4 = arith.extui %3 : vector<8x16xi1> to vector<8x16xi32>
    %5 = arith.sitofp %4 : vector<8x16xi32> to vector<8x16xf32>
    %6 = tpu.concatenate %5, %5 in 0 : vector<8x16xf32>, vector<8x16xf32> -> vector<16x16xf32>
    %c0_1 = arith.constant 0 : index
    %c0_2 = arith.constant 0 : index
    %7 = vector.load %arg1[%c0_1, %c0_2] : memref<16x32xf32, #tpu.memory_space<vmem>>, vector<16x32xf32>
    %8 = tpu.concatenate %6, %7 in 1 : vector<16x16xf32>, vector<16x32xf32> -> vector<16x48xf32>
    %c0_3 = arith.constant 0 : index
    %c0_4 = arith.constant 0 : index
    %c0_5 = arith.constant 0 : index
    %9 = vector.load %arg6[%c0_3, %c0_4, %c0_5] : memref<4x1x32xf32, #tpu.memory_space<vmem>>, vector<1x1x32xf32>
    %10 = vector.shape_cast %9 : vector<1x1x32xf32> to vector<1x32xf32>
    %c1 = arith.constant 1 : index
    %c0_6 = arith.constant 0 : index
    %c0_7 = arith.constant 0 : index
    %11 = vector.load %arg6[%c1, %c0_6, %c0_7] : memref<4x1x32xf32, #tpu.memory_space<vmem>>, vector<1x1x32xf32>
    %12 = vector.shape_cast %11 : vector<1x1x32xf32> to vector<1x32xf32>
    %c2 = arith.constant 2 : index
    %c0_8 = arith.constant 0 : index
    %c0_9 = arith.constant 0 : index
    %13 = vector.load %arg6[%c2, %c0_8, %c0_9] : memref<4x1x32xf32, #tpu.memory_space<vmem>>, vector<1x1x32xf32>
    %14 = vector.shape_cast %13 : vector<1x1x32xf32> to vector<1x32xf32>
    %c3 = arith.constant 3 : index
    %c0_10 = arith.constant 0 : index
    %c0_11 = arith.constant 0 : index
    %15 = vector.load %arg6[%c3, %c0_10, %c0_11] : memref<4x1x32xf32, #tpu.memory_space<vmem>>, vector<1x1x32xf32>
    %16 = vector.shape_cast %15 : vector<1x1x32xf32> to vector<1x32xf32>
    %c0_12 = arith.constant 0 : index
    %c0_13 = arith.constant 0 : index
    %c0_14 = arith.constant 0 : index
    %17 = vector.load %arg7[%c0_12, %c0_13, %c0_14] : memref<4x1x32xf32, #tpu.memory_space<vmem>>, vector<1x1x32xf32>
    %18 = vector.shape_cast %17 : vector<1x1x32xf32> to vector<1x32xf32>
    %c1_15 = arith.constant 1 : index
    %c0_16 = arith.constant 0 : index
    %c0_17 = arith.constant 0 : index
    %19 = vector.load %arg7[%c1_15, %c0_16, %c0_17] : memref<4x1x32xf32, #tpu.memory_space<vmem>>, vector<1x1x32xf32>
    %20 = vector.shape_cast %19 : vector<1x1x32xf32> to vector<1x32xf32>
    %c2_18 = arith.constant 2 : index
    %c0_19 = arith.constant 0 : index
    %c0_20 = arith.constant 0 : index
    %21 = vector.load %arg7[%c2_18, %c0_19, %c0_20] : memref<4x1x32xf32, #tpu.memory_space<vmem>>, vector<1x1x32xf32>
    %22 = vector.shape_cast %21 : vector<1x1x32xf32> to vector<1x32xf32>
    %c3_21 = arith.constant 3 : index
    %c0_22 = arith.constant 0 : index
    %c0_23 = arith.constant 0 : index
    %23 = vector.load %arg7[%c3_21, %c0_22, %c0_23] : memref<4x1x32xf32, #tpu.memory_space<vmem>>, vector<1x1x32xf32>
    %24 = vector.shape_cast %23 : vector<1x1x32xf32> to vector<1x32xf32>
    %c0_24 = arith.constant 0 : index
    %c0_25 = arith.constant 0 : index
    %25 = vector.load %arg3[%c0_24, %c0_25] : memref<48x400xf32, #tpu.memory_space<vmem>>, vector<48x400xf32>
    %cst = arith.constant dense<0.000000e+00> : vector<16x400xf32>
    %26 = tpu.matmul %8, %25, %cst {dimension_numbers = #tpu.dot_dimension_numbers<[1], [0], [0], [1], [0, 0, 1, 1], [], []>} : vector<16x48xf32>, vector<48x400xf32>, vector<16x400xf32> -> vector<16x400xf32>
    %27 = vector.extract_strided_slice %26 {offsets = [0, 384], sizes = [8, 16], strides = [1, 1]} : vector<16x400xf32> to vector<8x16xf32>
    %c0_26 = arith.constant 0 : index
    %c0_27 = arith.constant 0 : index
    %28 = vector.load %arg2[%c0_26, %c0_27] : memref<16x32xf32, #tpu.memory_space<vmem>>, vector<16x32xf32>
    %29 = vector.extract_strided_slice %28 {offsets = [0, 0], sizes = [8, 32], strides = [1, 1]} : vector<16x32xf32> to vector<8x32xf32>
    %30 = vector.extract_strided_slice %28 {offsets = [8, 0], sizes = [8, 32], strides = [1, 1]} : vector<16x32xf32> to vector<8x32xf32>
    %c0_28 = arith.constant 0 : index
    %c0_29 = arith.constant 0 : index
    %31 = vector.load %arg4[%c0_28, %c0_29] : memref<32x768xf32, #tpu.memory_space<vmem>>, vector<32x768xf32>
    %cst_30 = arith.constant dense<0.000000e+00> : vector<16x768xf32>
    %32 = tpu.matmul %28, %31, %cst_30 {dimension_numbers = #tpu.dot_dimension_numbers<[1], [0], [0], [1], [0, 0, 1, 1], [], []>} : vector<16x32xf32>, vector<32x768xf32>, vector<16x768xf32> -> vector<16x768xf32>
    %33 = vector.extract_strided_slice %26 {offsets = [0, 0], sizes = [8, 32], strides = [1, 1]} : vector<16x400xf32> to vector<8x32xf32>
    %34 = vector.extract_strided_slice %26 {offsets = [0, 128], sizes = [8, 32], strides = [1, 1]} : vector<16x400xf32> to vector<8x32xf32>
    %35 = vector.extract_strided_slice %26 {offsets = [0, 256], sizes = [8, 32], strides = [1, 1]} : vector<16x400xf32> to vector<8x32xf32>
    %36 = vector.extract_strided_slice %32 {offsets = [0, 0], sizes = [8, 32], strides = [1, 1]} : vector<16x768xf32> to vector<8x32xf32>
    %37 = vector.extract_strided_slice %32 {offsets = [0, 128], sizes = [8, 32], strides = [1, 1]} : vector<16x768xf32> to vector<8x32xf32>
    %38 = vector.extract_strided_slice %32 {offsets = [0, 256], sizes = [8, 32], strides = [1, 1]} : vector<16x768xf32> to vector<8x32xf32>
    %39 = arith.addf %33, %36 : vector<8x32xf32>
    %40 = vector.broadcast %10 : vector<1x32xf32> to vector<8x32xf32>
    %41 = arith.addf %39, %40 : vector<8x32xf32>
    %42 = arith.negf %41 : vector<8x32xf32>
    %43 = math.exp %42 : vector<8x32xf32>
    %cst_31 = arith.constant 1.000000e+00 : f32
    %44 = vector.broadcast %cst_31 : f32 to vector<8x32xf32>
    %45 = arith.addf %44, %43 : vector<8x32xf32>
    %46 = arith.divf %44, %45 : vector<8x32xf32>
    %47 = arith.addf %34, %37 : vector<8x32xf32>
    %48 = vector.broadcast %12 : vector<1x32xf32> to vector<8x32xf32>
    %49 = arith.addf %47, %48 : vector<8x32xf32>
    %50 = arith.negf %49 : vector<8x32xf32>
    %51 = math.exp %50 : vector<8x32xf32>
    %cst_32 = arith.constant 1.000000e+00 : f32
    %52 = vector.broadcast %cst_32 : f32 to vector<8x32xf32>
    %53 = arith.addf %52, %51 : vector<8x32xf32>
    %54 = arith.divf %52, %53 : vector<8x32xf32>
    %55 = vector.broadcast %14 : vector<1x32xf32> to vector<8x32xf32>
    %56 = arith.addf %35, %55 : vector<8x32xf32>
    %57 = vector.broadcast %16 : vector<1x32xf32> to vector<8x32xf32>
    %58 = arith.addf %38, %57 : vector<8x32xf32>
    %59 = arith.mulf %46, %58 : vector<8x32xf32>
    %60 = arith.addf %56, %59 : vector<8x32xf32>
    %61 = math.tanh %60 : vector<8x32xf32>
    %cst_33 = arith.constant 1.000000e+00 : f32
    %62 = vector.broadcast %cst_33 : f32 to vector<8x32xf32>
    %63 = arith.subf %62, %54 : vector<8x32xf32>
    %64 = arith.mulf %63, %61 : vector<8x32xf32>
    %65 = arith.mulf %54, %29 : vector<8x32xf32>
    %66 = arith.addf %64, %65 : vector<8x32xf32>
    %c0_34 = arith.constant 0 : index
    %c0_35 = arith.constant 0 : index
    %67 = vector.load %arg5[%c0_34, %c0_35] : memref<32x400xf32, #tpu.memory_space<vmem>>, vector<32x400xf32>
    %cst_36 = arith.constant dense<0.000000e+00> : vector<8x400xf32>
    %68 = tpu.matmul %66, %67, %cst_36 {dimension_numbers = #tpu.dot_dimension_numbers<[1], [0], [0], [1], [0, 0, 1, 1], [], []>} : vector<8x32xf32>, vector<32x400xf32>, vector<8x400xf32> -> vector<8x400xf32>
    %69 = vector.extract_strided_slice %68 {offsets = [0, 0], sizes = [8, 32], strides = [1, 1]} : vector<8x400xf32> to vector<8x32xf32>
    %70 = vector.extract_strided_slice %68 {offsets = [0, 128], sizes = [8, 32], strides = [1, 1]} : vector<8x400xf32> to vector<8x32xf32>
    %71 = vector.extract_strided_slice %68 {offsets = [0, 256], sizes = [8, 32], strides = [1, 1]} : vector<8x400xf32> to vector<8x32xf32>
    %72 = vector.extract_strided_slice %32 {offsets = [8, 384], sizes = [8, 32], strides = [1, 1]} : vector<16x768xf32> to vector<8x32xf32>
    %73 = vector.extract_strided_slice %32 {offsets = [8, 512], sizes = [8, 32], strides = [1, 1]} : vector<16x768xf32> to vector<8x32xf32>
    %74 = vector.extract_strided_slice %32 {offsets = [8, 640], sizes = [8, 32], strides = [1, 1]} : vector<16x768xf32> to vector<8x32xf32>
    %75 = arith.addf %69, %72 : vector<8x32xf32>
    %76 = vector.broadcast %18 : vector<1x32xf32> to vector<8x32xf32>
    %77 = arith.addf %75, %76 : vector<8x32xf32>
    %78 = arith.negf %77 : vector<8x32xf32>
    %79 = math.exp %78 : vector<8x32xf32>
    %cst_37 = arith.constant 1.000000e+00 : f32
    %80 = vector.broadcast %cst_37 : f32 to vector<8x32xf32>
    %81 = arith.addf %80, %79 : vector<8x32xf32>
    %82 = arith.divf %80, %81 : vector<8x32xf32>
    %83 = arith.addf %70, %73 : vector<8x32xf32>
    %84 = vector.broadcast %20 : vector<1x32xf32> to vector<8x32xf32>
    %85 = arith.addf %83, %84 : vector<8x32xf32>
    %86 = arith.negf %85 : vector<8x32xf32>
    %87 = math.exp %86 : vector<8x32xf32>
    %cst_38 = arith.constant 1.000000e+00 : f32
    %88 = vector.broadcast %cst_38 : f32 to vector<8x32xf32>
    %89 = arith.addf %88, %87 : vector<8x32xf32>
    %90 = arith.divf %88, %89 : vector<8x32xf32>
    %91 = vector.broadcast %22 : vector<1x32xf32> to vector<8x32xf32>
    %92 = arith.addf %71, %91 : vector<8x32xf32>
    %93 = vector.broadcast %24 : vector<1x32xf32> to vector<8x32xf32>
    %94 = arith.addf %74, %93 : vector<8x32xf32>
    %95 = arith.mulf %82, %94 : vector<8x32xf32>
    %96 = arith.addf %92, %95 : vector<8x32xf32>
    %97 = math.tanh %96 : vector<8x32xf32>
    %cst_39 = arith.constant 1.000000e+00 : f32
    %98 = vector.broadcast %cst_39 : f32 to vector<8x32xf32>
    %99 = arith.subf %98, %90 : vector<8x32xf32>
    %100 = arith.mulf %99, %97 : vector<8x32xf32>
    %101 = arith.mulf %90, %30 : vector<8x32xf32>
    %102 = arith.addf %100, %101 : vector<8x32xf32>
    %103 = tpu.concatenate %66, %102 in 0 : vector<8x32xf32>, vector<8x32xf32> -> vector<16x32xf32>
    %c0_40 = arith.constant 0 : index
    %c0_41 = arith.constant 0 : index
    %104 = vector.load %arg4[%c0_40, %c0_41] : memref<32x768xf32, #tpu.memory_space<vmem>>, vector<32x768xf32>
    %cst_42 = arith.constant dense<0.000000e+00> : vector<16x768xf32>
    %105 = tpu.matmul %103, %104, %cst_42 {dimension_numbers = #tpu.dot_dimension_numbers<[1], [0], [0], [1], [0, 0, 1, 1], [], []>} : vector<16x32xf32>, vector<32x768xf32>, vector<16x768xf32> -> vector<16x768xf32>
    %106 = vector.extract_strided_slice %26 {offsets = [8, 0], sizes = [8, 32], strides = [1, 1]} : vector<16x400xf32> to vector<8x32xf32>
    %107 = vector.extract_strided_slice %26 {offsets = [8, 128], sizes = [8, 32], strides = [1, 1]} : vector<16x400xf32> to vector<8x32xf32>
    %108 = vector.extract_strided_slice %26 {offsets = [8, 256], sizes = [8, 32], strides = [1, 1]} : vector<16x400xf32> to vector<8x32xf32>
    %109 = vector.extract_strided_slice %105 {offsets = [0, 0], sizes = [8, 32], strides = [1, 1]} : vector<16x768xf32> to vector<8x32xf32>
    %110 = vector.extract_strided_slice %105 {offsets = [0, 128], sizes = [8, 32], strides = [1, 1]} : vector<16x768xf32> to vector<8x32xf32>
    %111 = vector.extract_strided_slice %105 {offsets = [0, 256], sizes = [8, 32], strides = [1, 1]} : vector<16x768xf32> to vector<8x32xf32>
    %112 = arith.addf %106, %109 : vector<8x32xf32>
    %113 = vector.broadcast %10 : vector<1x32xf32> to vector<8x32xf32>
    %114 = arith.addf %112, %113 : vector<8x32xf32>
    %115 = arith.negf %114 : vector<8x32xf32>
    %116 = math.exp %115 : vector<8x32xf32>
    %cst_43 = arith.constant 1.000000e+00 : f32
    %117 = vector.broadcast %cst_43 : f32 to vector<8x32xf32>
    %118 = arith.addf %117, %116 : vector<8x32xf32>
    %119 = arith.divf %117, %118 : vector<8x32xf32>
    %120 = arith.addf %107, %110 : vector<8x32xf32>
    %121 = vector.broadcast %12 : vector<1x32xf32> to vector<8x32xf32>
    %122 = arith.addf %120, %121 : vector<8x32xf32>
    %123 = arith.negf %122 : vector<8x32xf32>
    %124 = math.exp %123 : vector<8x32xf32>
    %cst_44 = arith.constant 1.000000e+00 : f32
    %125 = vector.broadcast %cst_44 : f32 to vector<8x32xf32>
    %126 = arith.addf %125, %124 : vector<8x32xf32>
    %127 = arith.divf %125, %126 : vector<8x32xf32>
    %128 = vector.broadcast %14 : vector<1x32xf32> to vector<8x32xf32>
    %129 = arith.addf %108, %128 : vector<8x32xf32>
    %130 = vector.broadcast %16 : vector<1x32xf32> to vector<8x32xf32>
    %131 = arith.addf %111, %130 : vector<8x32xf32>
    %132 = arith.mulf %119, %131 : vector<8x32xf32>
    %133 = arith.addf %129, %132 : vector<8x32xf32>
    %134 = math.tanh %133 : vector<8x32xf32>
    %cst_45 = arith.constant 1.000000e+00 : f32
    %135 = vector.broadcast %cst_45 : f32 to vector<8x32xf32>
    %136 = arith.subf %135, %127 : vector<8x32xf32>
    %137 = arith.mulf %136, %134 : vector<8x32xf32>
    %138 = arith.mulf %127, %66 : vector<8x32xf32>
    %139 = arith.addf %137, %138 : vector<8x32xf32>
    %c0_46 = arith.constant 0 : index
    %c0_47 = arith.constant 0 : index
    %140 = vector.load %arg5[%c0_46, %c0_47] : memref<32x400xf32, #tpu.memory_space<vmem>>, vector<32x400xf32>
    %cst_48 = arith.constant dense<0.000000e+00> : vector<8x400xf32>
    %141 = tpu.matmul %139, %140, %cst_48 {dimension_numbers = #tpu.dot_dimension_numbers<[1], [0], [0], [1], [0, 0, 1, 1], [], []>} : vector<8x32xf32>, vector<32x400xf32>, vector<8x400xf32> -> vector<8x400xf32>
    %142 = vector.extract_strided_slice %141 {offsets = [0, 0], sizes = [8, 32], strides = [1, 1]} : vector<8x400xf32> to vector<8x32xf32>
    %143 = vector.extract_strided_slice %141 {offsets = [0, 128], sizes = [8, 32], strides = [1, 1]} : vector<8x400xf32> to vector<8x32xf32>
    %144 = vector.extract_strided_slice %141 {offsets = [0, 256], sizes = [8, 32], strides = [1, 1]} : vector<8x400xf32> to vector<8x32xf32>
    %145 = vector.extract_strided_slice %105 {offsets = [8, 384], sizes = [8, 32], strides = [1, 1]} : vector<16x768xf32> to vector<8x32xf32>
    %146 = vector.extract_strided_slice %105 {offsets = [8, 512], sizes = [8, 32], strides = [1, 1]} : vector<16x768xf32> to vector<8x32xf32>
    %147 = vector.extract_strided_slice %105 {offsets = [8, 640], sizes = [8, 32], strides = [1, 1]} : vector<16x768xf32> to vector<8x32xf32>
    %148 = arith.addf %142, %145 : vector<8x32xf32>
    %149 = vector.broadcast %18 : vector<1x32xf32> to vector<8x32xf32>
    %150 = arith.addf %148, %149 : vector<8x32xf32>
    %151 = arith.negf %150 : vector<8x32xf32>
    %152 = math.exp %151 : vector<8x32xf32>
    %cst_49 = arith.constant 1.000000e+00 : f32
    %153 = vector.broadcast %cst_49 : f32 to vector<8x32xf32>
    %154 = arith.addf %153, %152 : vector<8x32xf32>
    %155 = arith.divf %153, %154 : vector<8x32xf32>
    %156 = arith.addf %143, %146 : vector<8x32xf32>
    %157 = vector.broadcast %20 : vector<1x32xf32> to vector<8x32xf32>
    %158 = arith.addf %156, %157 : vector<8x32xf32>
    %159 = arith.negf %158 : vector<8x32xf32>
    %160 = math.exp %159 : vector<8x32xf32>
    %cst_50 = arith.constant 1.000000e+00 : f32
    %161 = vector.broadcast %cst_50 : f32 to vector<8x32xf32>
    %162 = arith.addf %161, %160 : vector<8x32xf32>
    %163 = arith.divf %161, %162 : vector<8x32xf32>
    %164 = vector.broadcast %22 : vector<1x32xf32> to vector<8x32xf32>
    %165 = arith.addf %144, %164 : vector<8x32xf32>
    %166 = vector.broadcast %24 : vector<1x32xf32> to vector<8x32xf32>
    %167 = arith.addf %147, %166 : vector<8x32xf32>
    %168 = arith.mulf %155, %167 : vector<8x32xf32>
    %169 = arith.addf %165, %168 : vector<8x32xf32>
    %170 = math.tanh %169 : vector<8x32xf32>
    %cst_51 = arith.constant 1.000000e+00 : f32
    %171 = vector.broadcast %cst_51 : f32 to vector<8x32xf32>
    %172 = arith.subf %171, %163 : vector<8x32xf32>
    %173 = arith.mulf %172, %170 : vector<8x32xf32>
    %174 = arith.mulf %163, %102 : vector<8x32xf32>
    %175 = arith.addf %173, %174 : vector<8x32xf32>
    %176 = tpu.concatenate %139, %175 in 0 : vector<8x32xf32>, vector<8x32xf32> -> vector<16x32xf32>
    %177 = vector.extract_strided_slice %141 {offsets = [0, 384], sizes = [8, 16], strides = [1, 1]} : vector<8x400xf32> to vector<8x16xf32>
    %178 = arith.addf %27, %177 : vector<8x16xf32>
    %c0_52 = arith.constant 0 : index
    %c0_53 = arith.constant 0 : index
    %179 = vector.load %arg8[%c0_52, %c0_53] : memref<1x16xf32, #tpu.memory_space<vmem>>, vector<1x16xf32>
    %180 = vector.broadcast %179 : vector<1x16xf32> to vector<8x16xf32>
    %181 = arith.addf %178, %180 : vector<8x16xf32>
    %c0_54 = arith.constant 0 : index
    %c0_55 = arith.constant 0 : index
    %182 = vector.load %arg9[%c0_54, %c0_55] : memref<8x16xf32, #tpu.memory_space<vmem>>, vector<8x16xf32>
    tpu.vector_store %arg9[%c0_54, %c0_55], %181 {strides = array<i32>} : memref<8x16xf32, #tpu.memory_space<vmem>>, vector<8x16xf32>,
    %c0_56 = arith.constant 0 : index
    %c0_57 = arith.constant 0 : index
    %183 = vector.load %arg10[%c0_56, %c0_57] : memref<16x32xf32, #tpu.memory_space<vmem>>, vector<16x32xf32>
    tpu.vector_store %arg10[%c0_56, %c0_57], %176 {strides = array<i32>} : memref<16x32xf32, #tpu.memory_space<vmem>>, vector<16x32xf32>,
    return
  }
}

</mosaic_0001>

<bundles_post_ra>
// kernel: tpu_custom_call.1
= control target key start
LH: loop header
LB: loop body
LE: loop exit
PB: predicated region body
PF: predicated region fallthrough
CT: control target
= control target key end

     0   :  { %16 = vsyncpa [#allocation3], 0  ;;  %s1933_s0 = inlined_call_operand.vmem [shape: s32[8,1], index: 0, kind: input, shape index: {}]   ;;  %s1934_s1 = inlined_call_operand.vmem [shape: f32[16,32], index: 1, kind: input, shape index: {}]   ;;  %s1935_s2 = inlined_call_operand.hbm [shape: f32[16,32], index: 2, kind: input, shape index: {}, may-alias: {2,10}]   ;;  %s1936_s3 = inlined_call_operand.hbm [shape: f32[48,400], index: 3, kind: input, shape index: {}]   ;;  %s1937_s4 = inlined_call_operand.hbm [shape: f32[32,768], index: 4, kind: input, shape index: {}]   ;;  %s1938_s5 = inlined_call_operand.hbm [shape: f32[32,400], index: 5, kind: input, shape index: {}]   ;;  %s1939_s6 = inlined_call_operand.vmem [shape: f32[4,1,32], index: 6, kind: input, shape index: {}]   ;;  %s1940_s7 = inlined_call_operand.vmem [shape: f32[4,1,32], index: 7, kind: input, shape index: {}]   ;;  %s1941_s8 = inlined_call_operand.vmem [shape: f32[1,16], index: 8, kind: input, shape index: {}]   ;;  %s1942_s9 = inlined_call_operand.hbm [shape: f32[8,16], index: 9, kind: output, shape index: {0}]   ;;  %s1943_s10 = inlined_call_operand.hbm [shape: f32[16,32], index: 10, kind: output, shape index: {1}, may-alias: {2,10}]  }
   0x1   :  { %17 = vsyncpa [#allocation6], 0 }
   0x2   :  { %18 = vsyncpa [#allocation9], 0 }
   0x3   :  { %19 = vsyncpa [#allocation4], 0 }
   0x4   :  { %20 = vsyncpa [#allocation12], 0  ;;  %s1525_s13 = smov [#allocation5]  }
   0x5   :  { %s42_s14 = sshll.u32 %s1525_s13, 4  ;;  %s43_s14 = int_to_ptr.vmem [resolvable:$true] %s42_s14 }
   0x6   :  { %s1403_s15 = scalar_lea.vmem %s43_s14, 3072  ;;  %p1408_p1 = scmp.lt.s32.totalorder %s43_s14, %s43_s14 }
   0x7   :  { %p1404_p0 = scmp.ne.s32.totalorder %s43_s14, %s1403_s15  ;;  %p1409_p2 = scmp.lt.s32.totalorder %s1403_s15, %s1403_s15 }
   0x9   :  { %p1410_p3 = por %p1409_p2, %p1408_p1 }
   0xb   :  { %p1411_p4 = pnand %p1410_p3, %p1404_p0 }
   0xd   :  { %1414 = shalt.err (!%p1411_p4)
}
   0xe   :  { %s1526_s16 = smov 512   ;;  %s1527_s17 = smov 32  }
   0xf   :  { %48 = dma.hbm_to_vmem [thread:$0]  %s1936_s3, 3072, %s43_s14, [#allocation6], %s1526_s16, %s1526_s16, %s1527_s17  }
  0x10   :  { %s1528_s20 = smov [#allocation2]  }
  0x11   :  { %s30_s21 = sshll.u32 %s1528_s20, 4  ;;  %s31_s21 = int_to_ptr.vmem [resolvable:$true] %s30_s21 }
  0x12   :  { %s1423_s22 = scalar_lea.vmem %s31_s21, 256  ;;  %p1428_p6 = scmp.lt.s32.totalorder %s31_s21, %s31_s21 }
  0x13   :  { %p1424_p5 = scmp.ne.s32.totalorder %s31_s21, %s1423_s22  ;;  %p1429_p7 = scmp.lt.s32.totalorder %s1423_s22, %s1423_s22 }
  0x15   :  { %p1430_p8 = por %p1429_p7, %p1428_p6 }
  0x17   :  { %p1431_p9 = pnand %p1430_p8, %p1424_p5 }
  0x19   :  { %1434 = shalt.err (!%p1431_p9)
}
  0x1a   :  { %s1529_s23 = smov 128   ;;  %s1530_s24 = smov 8  }
  0x1b   :  { %36 = dma.hbm_to_vmem [thread:$0]  %s1935_s2, 256, %s31_s21, [#allocation3], %s1529_s23, %s1529_s23, %s1530_s24  }
  0x1c   :  { %s1531_s3 = smov [#allocation7]  }
  0x1d   :  { %s54_s27 = sshll.u32 %s1531_s3, 4  ;;  %s55_s27 = int_to_ptr.vmem [resolvable:$true] %s54_s27 }
  0x1e   :  { %s1443_s28 = scalar_lea.vmem %s55_s27, 3072  ;;  %p1448_p11 = scmp.lt.s32.totalorder %s55_s27, %s55_s27 }
  0x1f   :  { %p1444_p10 = scmp.ne.s32.totalorder %s55_s27, %s1443_s28  ;;  %p1449_p12 = scmp.lt.s32.totalorder %s1443_s28, %s1443_s28 }
  0x21   :  { %p1450_p13 = por %p1449_p12, %p1448_p11 }
  0x23   :  { %p1451_p0 = pnand %p1450_p13, %p1444_p10 }
  0x25   :  { %1454 = shalt.err (!%p1451_p0)
}
  0x26   :  { %s1532_s29 = smov 768   ;;  %s1533_s30 = smov 48  }
  0x27   :  { %60 = dma.hbm_to_vmem [thread:$0]  %s1937_s4, 3072, %s55_s27, [#allocation6], %s1532_s29, %s1532_s29, %s1533_s30  }
  0x28   :  { %s1534_s13 = smov [#allocation8]  }
  0x29   :  { %s66_s14 = sshll.u32 %s1534_s13, 4  ;;  %s67_s14 = int_to_ptr.vmem [resolvable:$true] %s66_s14 }
  0x2a   :  { %s1463_s2 = scalar_lea.vmem %s67_s14, 2048  ;;  %p1468_p2 = scmp.lt.s32.totalorder %s67_s14, %s67_s14 }
  0x2b   :  { %p1464_p1 = scmp.ne.s32.totalorder %s67_s14, %s1463_s2  ;;  %p1469_p3 = scmp.lt.s32.totalorder %s1463_s2, %s1463_s2 }
  0x2d   :  { %p1470_p4 = por %p1469_p3, %p1468_p2 }
  0x2f   :  { %p1471_p5 = pnand %p1470_p4, %p1464_p1 }
  0x31   :  { %1474 = shalt.err (!%p1471_p5)
}
  0x32   :  { %72 = dma.hbm_to_vmem [thread:$0]  %s1938_s5, 2048, %s67_s14, [#allocation9], %s1526_s16, %s1526_s16, %s1527_s17  }
  0x33   :  { %1515 = dma.done.wait [#allocation3], 256  }
  0x34   :  { %1516 = vsyncadd [#allocation3], 4294967040 }
  0x35   :  { %1517 = dma.done.wait [#allocation6], 6144  }
  0x36   :  { %1518 = vsyncadd [#allocation6], 4294961152 }
  0x37   :  { %1519 = dma.done.wait [#allocation9], 2048  }
  0x38   :  { %1520 = vsyncadd [#allocation9], 4294965248  ;;  %v1535_v0 = vmov 0   ;;  %v1536_v1 = vmov 0.0   ;;  %v91_v2 = vld [vmem:[%s1933_s0] sm:$0xff]  ;;  %v101_v3 = vld [vmem:[%s1934_s1 + $0x8] sm:$0xff]  ;;  %v92_v31 = vlaneseq }
  0x39   :  { %1354 = vset.pattern.permute.xlu0 %v1535_v0  ;;  %222 = vmatprep.mubr.f32.mxu0 %v1536_v1  ;;  %v100_v4 = vld [vmem:[%s1934_s1] sm:$0xff]  ;;  %s1537_s17 = smov 16   ;;  %v148_v5 = vld [vmem:[#allocation5 + $0xa8] sm:$0xff]  ;;  %v147_v6 = vld [vmem:[#allocation5 + $0xa0] sm:$0xff]  ;;  %vm151_vm1 = vcmask 392192   ;;  %vm110_vm2 = vcmask 130048  }
  0x3a   :  { %299 = vmatprep.mubr.f32.mxu1 %v1536_v1  ;;  %95 = vperm.xlu0 %1354, %v91_v2   ;;  %v150_v7 = vld [vmem:[#allocation5 + $0xb8] sm:$0xff]  ;;  %v144_v8 = vld [vmem:[#allocation5 + $0x88] sm:$0xff]  ;;  %v149_v9 = vld [vmem:[#allocation5 + $0xb0] sm:$0xff]  ;;  %v93_v32 = vand.u32 127, %v92_v31  ;;  %vm337_vm3 = vcmask 261120   ;;  %s1538_s18 = smov [#allocation10]  }
  0x3b   :  { %106 = vrot.lane.b32.xlu1 %v101_v3, %s1537_s17  ;;  %178 = vmatprep.subr.mxu0 %v148_v5  ;;  %v143_v10 = vld [vmem:[#allocation5 + $0x80] sm:$0xff]  ;;  %v146_v11 = vld [vmem:[#allocation5 + $0x98] sm:$0xff]  ;;  %v140_v12 = vld [vmem:[#allocation5 + $0x68] sm:$0xff]  ;;  %s1268_s4 = sshll.u32 %s1538_s18, 4  ;;  %s1269_s4 = int_to_ptr.vmem [resolvable:$true] %s1268_s4 }
  0x3c   :  { %255 = vmatprep.subr.mxu1 %v150_v7  ;;  %179 = vmatpush1.msra.mxu0 %v147_v6  ;;  %v145_v13 = vld [vmem:[#allocation5 + $0x90] sm:$0xff]  ;;  %v139_v14 = vld [vmem:[#allocation5 + $0x60] sm:$0xff]  ;;  %v142_v15 = vld [vmem:[#allocation5 + $0x78] sm:$0xff]  ;;  %s1475_s19 = scalar_lea.vmem %s1269_s4, 128  ;;  %p1480_p7 = scmp.lt.s32.totalorder %s1269_s4, %s1269_s4 }
  0x3d   :  { %256 = vmatpush1.msra.mxu1 %v149_v9  ;;  %180 = vmatprep.subr.mxu0 %v144_v8  ;;  %v136_v16 = vld [vmem:[#allocation5 + $0x48] sm:$0xff]  ;;  %v141_v17 = vld [vmem:[#allocation5 + $0x70] sm:$0xff]  ;;  %v135_v18 = vld [vmem:[#allocation5 + $0x40] sm:$0xff]  ;;  %p1476_p6 = scmp.ne.s32.totalorder %s1269_s4, %s1475_s19  ;;  %p1481_p8 = scmp.lt.s32.totalorder %s1475_s19, %s1475_s19 }
  0x3e   :  { %257 = vmatprep.subr.mxu1 %v146_v11  ;;  %104 = vrot.lane.b32.xlu0 %v100_v4, %s1537_s17  ;;  %v138_v19 = vld [vmem:[#allocation5 + $0x58] sm:$0xff]  ;;  %v132_v20 = vld [vmem:[#allocation5 + $0x28] sm:$0xff]  ;;  %v137_v21 = vld [vmem:[#allocation5 + $0x50] sm:$0xff] }
  0x3f   :  { %181 = vmatpush1.msra.mxu0 %v143_v10  ;;  %258 = vmatpush1.msra.mxu1 %v145_v13  ;;  %v131_v22 = vld [vmem:[#allocation5 + $0x20] sm:$0xff]  ;;  %v134_v23 = vld [vmem:[#allocation5 + $0x38] sm:$0xff]  ;;  %v128_v24 = vld [vmem:[#allocation5 + $0x8] sm:$0xff]  ;;  %p1482_p9 = por %p1481_p8, %p1480_p7 }
  0x40   :  { %182 = vmatprep.subr.mxu0 %v140_v12  ;;  %259 = vmatprep.subr.mxu1 %v142_v15  ;;  %v133_v25 = vld [vmem:[#allocation5 + $0x30] sm:$0xff]  ;;  %v127_v26 = vld [vmem:[#allocation5] sm:$0xff]  ;;  %v130_v27 = vld [vmem:[#allocation5 + $0x18] sm:$0xff] }
  0x41   :  { %183 = vmatpush1.msra.mxu0 %v139_v14  ;;  %260 = vmatpush1.msra.mxu1 %v141_v17  ;;  %v129_v28 = vld [vmem:[#allocation5 + $0x10] sm:$0xff]  ;;  %v1627_v29 = vld [vmem:[#allocation7 + $0x98] sm:$0xff]  ;;  %v1629_v30 = vld [vmem:[#allocation7 + $0xa8] sm:$0xff]  ;;  %p1483_p10 = pnand %p1482_p9, %p1476_p6 }
  0x42   :  { %184 = vmatprep.subr.mxu0 %v136_v16  ;;  %261 = vmatprep.subr.mxu1 %v138_v19  ;;  %v1634_v36 = vld [vmem:[#allocation7 + $0x90] sm:$0xff]  ;;  %v1637_v38 = vld [vmem:[#allocation7 + $0x68] sm:$0xff]  ;;  %v1641_v40 = vld [vmem:[#allocation7 + $0x60] sm:$0xff] }
  0x43   :  { %185 = vmatpush1.msra.mxu0 %v135_v18  ;;  %262 = vmatpush1.msra.mxu1 %v137_v21  ;;  %v1643_v41 = vld [vmem:[#allocation7 + $0xa0] sm:$0xff]  ;;  %v1647_v42 = vld [vmem:[#allocation7 + $0x38] sm:$0xff]  ;;  %v1651_v43 = vld [vmem:[#allocation7 + $0x30] sm:$0xff] }
  0x44   :  { %186 = vmatprep.subr.mxu0 %v132_v20  ;;  %263 = vmatprep.subr.mxu1 %v134_v23  ;;  %v1655_v45 = vld [vmem:[#allocation7 + $0x8] sm:$0xff]  ;;  %v1660_v46 = vld [vmem:[#allocation7] sm:$0xff]  ;;  %v1662_v47 = vld [vmem:[#allocation7 + $0x78] sm:$0xff] }
  0x45   :  { %187 = vmatpush1.msra.mxu0 %v131_v22  ;;  %264 = vmatpush1.msra.mxu1 %v133_v25  ;;  %v1666_v48 = vld [vmem:[#allocation2] sm:$0xff]  ;;  %v1672_v50 = vld [vmem:[#allocation7 + $0x48] sm:$0xff]  ;;  %v1676_v51 = vld [vmem:[#allocation7 + $0x40] sm:$0xff] }
  0x46   :  { %188 = vmatprep.subr.mxu0 %v128_v24  ;;  %265 = vmatprep.subr.mxu1 %v130_v27  ;;  %v1668_v49 = vld [vmem:[#allocation7 + $0x70] sm:$0xff]  ;;  %v1681_v52 = vld [vmem:[#allocation7 + $0x18] sm:$0xff]  ;;  %v1700_v56 = vld [vmem:[#allocation7 + $0x88] sm:$0xff] }
  0x47   :  { %189 = vmatpush1.msra.mxu0 %v127_v26  ;;  %266 = vmatpush1.msra.mxu1 %v129_v28  ;;  %v1684_v53 = vld [vmem:[#allocation7 + $0x10] sm:$0xff]  ;;  %v1694_v54 = vld [vmem:[#allocation7 + $0xb8] sm:$0xff]  ;;  %v1703_v57 = vld [vmem:[#allocation7 + $0x80] sm:$0xff] }
  0x48   :  { %368 = vmatprep.subr.mxu0 %v1627_v29  ;;  %443 = vmatprep.subr.mxu1 %v1629_v30  ;;  %v1697_v55 = vld [vmem:[#allocation7 + $0xb0] sm:$0xff]  ;;  %v1706_v58 = vld [vmem:[#allocation7 + $0x58] sm:$0xff]  ;;  %v1715_v61 = vld [vmem:[#allocation7 + $0x28] sm:$0xff] }
  0x49   :  { %v1709_v59 = vld [vmem:[#allocation2 + $0x8] sm:$0xff]  ;;  %v1711_v60 = vld [vmem:[#allocation7 + $0x50] sm:$0xff]  ;;  %v1720_v62 = vld [vmem:[#allocation7 + $0x20] sm:$0xff] }
  0x4a   :  { %v1724_v63 = vld [vmem:[#allocation8 + $0x68] sm:$0xff]  ;;  %v1726_v0 = vld [vmem:[#allocation8 + $0x78] sm:$0xff]  ;;  %v1731_v2 = vld [vmem:[#allocation8 + $0x60] sm:$0xff] }
  0x4b   :  { %v1733_v3 = vld [vmem:[#allocation8 + $0x70] sm:$0xff]  ;;  %v1738_v4 = vld [vmem:[#allocation8 + $0x48] sm:$0xff]  ;;  %v1740_v5 = vld [vmem:[#allocation8 + $0x58] sm:$0xff] }
  0x4c   :  { %v1744_v6 = vld [vmem:[#allocation8 + $0x40] sm:$0xff]  ;;  %v1746_v7 = vld [vmem:[#allocation8 + $0x50] sm:$0xff]  ;;  %v1750_v8 = vld [vmem:[#allocation8 + $0x28] sm:$0xff] }
  0x4d   :  { %v1752_v9 = vld [vmem:[#allocation8 + $0x38] sm:$0xff]  ;;  %v1756_v10 = vld [vmem:[#allocation8 + $0x20] sm:$0xff]  ;;  %v1758_v11 = vld [vmem:[#allocation8 + $0x30] sm:$0xff] }
  0x4e   :  { %v1762_v12 = vld [vmem:[#allocation8 + $0x8] sm:$0xff]  ;;  %v1764_v13 = vld [vmem:[#allocation8 + $0x18] sm:$0xff]  ;;  %v1769_v14 = vld [vmem:[#allocation8] sm:$0xff] }
  0x4f   :  { %v1771_v15 = vld [vmem:[#allocation8 + $0x10] sm:$0xff] }
  0x50   :  { %v1316_v21 = vld [vmem:[%s1939_s6 + $0x2] ss:$0 sm:$0xff]  ;;  %v1796_v26 = vld [vmem:[%s1939_s6] ss:$0 sm:$0xff] }
  0xad   :  { %v107_v39 = vpop.permute.xlu1 %106 }
  0xb5   :  { %v96_v33 = vpop.permute.xlu0 %95 }
  0xb6   :  { %vm97_vm0 = vcmp.eq.s32.totalorder %v93_v32, %v96_v33 }
  0xb7   :  { %v1295_v34 = vsel %vm97_vm0, 1.0, %v1536_v1 }
  0xb8   :  { %v112_v44 = vsel %vm110_vm2, %v1295_v34, %v107_v39 }
  0xb9   :  { %v105_v35 = vpop.permute.xlu0 %104 }
  0xba   :  { %v111_v37 = vsel %vm110_vm2, %v1295_v34, %v105_v35  ;;  %v1802_v34 = vld [vmem:[%s1939_s6 + $0x1] ss:$0 sm:$0xff] }
  0xbb   :  { %1302 = vmatmul.mubr.msk.f32.vlgmr.msra.gmra.mxu0 %vm151_vm1, %v111_v37  ;;  %1304 = vmatmul.mubr.msk.f32.vlgmr.msra.gmra.mxu1 %vm151_vm1, %v111_v37 }
  0xbc   :  { %369 = vmatpush1.msra.mxu0 %v1634_v36  ;;  %228 = vmatprep.mubr.f32.mxu0 %v1536_v1 }
  0xbd   :  { %370 = vmatprep.subr.mxu0 %v1637_v38  ;;  %305 = vmatprep.mubr.f32.mxu1 %v1536_v1 }
  0xbe   :  { %371 = vmatpush1.msra.mxu0 %v1641_v40  ;;  %444 = vmatpush1.msra.mxu1 %v1643_v41 }
  0xbf   :  { %372 = vmatprep.subr.mxu0 %v1647_v42  ;;  %1303 = vmatmul.mubr.msk.f32.gmra.mxu0 %vm151_vm1, %v112_v44 }
  0xc0   :  { %1305 = vmatmul.mubr.msk.f32.gmra.mxu1 %vm151_vm1, %v112_v44  ;;  %373 = vmatpush1.msra.mxu0 %v1651_v43 }
  0xc1   :  { %374 = vmatprep.subr.mxu0 %v1655_v45  ;;  %408 = vmatprep.mubr.f32.mxu0 %v1536_v1 }
  0xc2   :  { %375 = vmatpush1.msra.mxu0 %v1660_v46  ;;  %445 = vmatprep.subr.mxu1 %v1662_v47 }
  0xc3   :  { %1306 = vmatmul.mubr.msk.f32.vlgmr.msra.gmra.mxu0 %vm337_vm3, %v1666_v48  ;;  %446 = vmatpush1.msra.mxu1 %v1668_v49 }
  0xc4   :  { %447 = vmatprep.subr.mxu1 %v1672_v50  ;;  %483 = vmatprep.mubr.f32.mxu1 %v1536_v1 }
  0xc5   :  { %448 = vmatpush1.msra.mxu1 %v1676_v51  ;;  %414 = vmatprep.mubr.f32.mxu0 %v1536_v1 }
  0xc6   :  { %449 = vmatprep.subr.mxu1 %v1681_v52  ;;  %518 = vmatprep.subr.mxu0 %v1694_v54 }
  0xc7   :  { %450 = vmatpush1.msra.mxu1 %v1684_v53  ;;  %519 = vmatpush1.msra.mxu0 %v1697_v55 }
  0xc8   :  { %1308 = vmatmul.mubr.msk.f32.vlgmr.msra.gmra.mxu1 %vm337_vm3, %v1666_v48  ;;  %520 = vmatprep.subr.mxu0 %v1700_v56 }
  0xc9   :  { %488 = vmatprep.mubr.f32.mxu1 %v1536_v1  ;;  %521 = vmatpush1.msra.mxu0 %v1703_v57 }
  0xca   :  { %522 = vmatprep.subr.mxu0 %v1706_v58  ;;  %1307 = vmatmul.mubr.msk.f32.gmra.mxu0 %vm337_vm3, %v1709_v59 }
  0xcb   :  { %523 = vmatpush1.msra.mxu0 %v1711_v60  ;;  %558 = vmatprep.mubr.f32.mxu0 %v1536_v1 }
  0xcc   :  { %1309 = vmatmul.mubr.msk.f32.gmra.mxu1 %vm337_vm3, %v1709_v59  ;;  %524 = vmatprep.subr.mxu0 %v1715_v61 }
  0xcd   :  { %701 = vmatprep.mubr.f32.mxu1 %v1536_v1  ;;  %525 = vmatpush1.msra.mxu0 %v1720_v62 }
  0xce   :  { %661 = vmatprep.subr.mxu1 %v1724_v63  ;;  %732 = vmatprep.subr.mxu0 %v1726_v0 }
  0xcf   :  { %1310 = vmatmul.mubr.msk.f32.vlgmr.msra.gmra.mxu0 %vm337_vm3, %v1666_v48  ;;  %662 = vmatpush1.msra.mxu1 %v1731_v2 }
  0xd0   :  { %733 = vmatpush1.msra.mxu0 %v1733_v3  ;;  %663 = vmatprep.subr.mxu1 %v1738_v4 }
  0xd1   :  { %734 = vmatprep.subr.mxu0 %v1740_v5  ;;  %664 = vmatpush1.msra.mxu1 %v1744_v6 }
  0xd2   :  { %735 = vmatpush1.msra.mxu0 %v1746_v7  ;;  %562 = vmatprep.mubr.f32.mxu0 %v1536_v1 }
  0xd3   :  { %665 = vmatprep.subr.mxu1 %v1750_v8  ;;  %736 = vmatprep.subr.mxu0 %v1752_v9 }
  0xd4   :  { %1311 = vmatmul.mubr.msk.f32.gmra.mxu0 %vm337_vm3, %v1709_v59  ;;  %666 = vmatpush1.msra.mxu1 %v1756_v10 }
  0xd5   :  { %737 = vmatpush1.msra.mxu0 %v1758_v11  ;;  %667 = vmatprep.subr.mxu1 %v1762_v12 }
  0xd6   :  { %738 = vmatprep.subr.mxu0 %v1764_v13  ;;  %668 = vmatpush1.msra.mxu1 %v1769_v14 }
  0xd7   :  { %739 = vmatpush1.msra.mxu0 %v1771_v15  ;;  %772 = vmatprep.mubr.f32.mxu0 %v1536_v1 }
  0xd8   :  { %854 = vmatprep.subr.mxu1 %v1627_v29  ;;  %929 = vmatprep.subr.mxu0 %v1629_v30 }
 0x17b   :  { %v224_v16 = vpop.f32.mrf.mxu0  ;;  %v301_v17 = vpop.f32.mrf.mxu1 }
 0x17d   :  { %v226_v18 = vpop.f32.mrf.mxu0  ;;  %v1782_v19 = vpop.f32.mrf.mxu1 }
 0x17f   :  { %v1784_v20 = vpop.f32.mrf.mxu0 }
 0x180   :  { %v307_v22 = vpop.f32.mrf.mxu1 }
 0x181   :  { %v1789_v23 = vadd.f32 %v1316_v21, %v307_v22  ;;  %v1791_v24 = vpop.f32.mrf.mxu0 }
 0x182   :  { %v309_v25 = vpop.f32.mrf.mxu1 }
 0x183   :  { %v410_v27 = vpop.f32.mrf.mxu0 }
 0x184   :  { %v569_v28 = vadd.f32 %v410_v27, %v224_v16 }
 0x185   :  { %v412_v29 = vpop.f32.mrf.mxu0 }
 0x186   :  { %v576_v30 = vadd.f32 %v1796_v26, %v569_v28  ;;  %v583_v32 = vadd.f32 %v412_v29, %v226_v18  ;;  %v1808_v18 = vld [vmem:[%s1939_s6 + $0x3] ss:$0 sm:$0xff]  ;;  %v603_v29 = vadd.f32 %v1316_v21, %v301_v17 }
 0x188   :  { %v1313_v31 = vmul.f32 -1.442695, %v576_v30  ;;  %v485_v33 = vpop.f32.mrf.mxu1  ;;  %v590_v37 = vadd.f32 %v1802_v34, %v583_v32 }
 0x189   :  { %v610_v27 = vadd.f32 %v1808_v18, %v485_v33 }
 0x18a   :  { %1355 = vpow2.f32 %v1313_v31  ;;  %v487_v35 = vpop.f32.mrf.mxu1  ;;  %v1315_v39 = vmul.f32 -1.442695, %v590_v37 }
 0x18c   :  { %1357 = vpow2.f32 %v1315_v39 }
 0x197   :  { %v1356_v44 = vpop.eup %1355 }
 0x198   :  { %v580_v22 = vadd.f32 1.0, %v1356_v44 }
 0x199   :  { %v1358_v16 = vpop.eup %1357 }
 0x19a   :  { %1359 = vrcp.f32 %v580_v22  ;;  %v594_v25 = vadd.f32 1.0, %v1358_v16 }
 0x19c   :  { %1361 = vrcp.f32 %v594_v25 }
 0x1a7   :  { %v1360_v28 = vpop.eup %1359 }
 0x1a8   :  { %v611_v30 = vmul.f32 %v1360_v28, %v610_v27 }
 0x1a9   :  { %v1362_v32 = vpop.eup %1361 }
 0x1aa   :  { %v612_v31 = vadd.f32 %v611_v30, %v603_v29  ;;  %v614_v35 = vsub.f32 1.0, %v1362_v32  ;;  %v616_v44 = vmul.f32 %v1362_v32, %v1666_v48 }
 0x1ac   :  { %1363 = vtanh.f32 %v612_v31 }
 0x1b9   :  { %v1364_v37 = vpop.eup %1363 }
 0x1ba   :  { %v615_v39 = vmul.f32 %v1364_v37, %v614_v35 }
 0x1bc   :  { %v1812_v22 = vadd.f32 %v616_v44, %v615_v39 }
 0x1be   :  { %1318 = vmatmul.mubr.msk.f32.vlgmr.msra.gmra.mxu1 %vm337_vm3, %v1812_v22  ;;  %1319 = vmatmul.mubr.msk.f32.vlgmr.msra.gmra.mxu0 %vm337_vm3, %v1812_v22 }
 0x1bf   :  { %855 = vmatpush1.msra.mxu1 %v1634_v36  ;;  %930 = vmatpush1.msra.mxu0 %v1643_v41  ;;  %v416_v36 = vpop.f32.mrf.mxu0 }
 0x1c0   :  { %856 = vmatprep.subr.mxu1 %v1637_v38  ;;  %931 = vmatprep.subr.mxu0 %v1662_v47  ;;  %v490_v38 = vpop.f32.mrf.mxu1  ;;  %v1860_v47 = vld [vmem:[%s1940_s7] ss:$0 sm:$0xff] }
 0x1c1   :  { %857 = vmatpush1.msra.mxu1 %v1641_v40  ;;  %932 = vmatpush1.msra.mxu0 %v1668_v49  ;;  %v417_v40 = vpop.f32.mrf.mxu0 }
 0x1c2   :  { %858 = vmatprep.subr.mxu1 %v1647_v42  ;;  %933 = vmatprep.subr.mxu0 %v1672_v50 }
 0x1c3   :  { %859 = vmatpush1.msra.mxu1 %v1651_v43  ;;  %934 = vmatpush1.msra.mxu0 %v1676_v51  ;;  %v560_v41 = vpop.f32.mrf.mxu0 }
 0x1c4   :  { %860 = vmatprep.subr.mxu1 %v1655_v45  ;;  %935 = vmatprep.subr.mxu0 %v1681_v52 }
 0x1c5   :  { %861 = vmatpush1.msra.mxu1 %v1660_v46  ;;  %894 = vmatprep.mubr.f32.mxu1 %v1536_v1  ;;  %v561_v42 = vpop.f32.mrf.mxu0  ;;  %v491_v46 = vpop.f32.mrf.mxu1 }
 0x1c6   :  { %936 = vmatpush1.msra.mxu0 %v1684_v53  ;;  %969 = vmatprep.mubr.f32.mxu0 %v1536_v1 }
 0x1c7   :  { %1326 = vmatmul.mubr.msk.f32.vlgmr.msra.gmra.mxu1 %vm337_vm3, %v1812_v22  ;;  %1328 = vmatmul.mubr.msk.f32.vlgmr.msra.gmra.mxu0 %vm337_vm3, %v1812_v22  ;;  %v564_v43 = vpop.f32.mrf.mxu0 }
 0x1c8   :  { %1004 = vmatprep.subr.mxu1 %v1694_v54  ;;  %1107 = vmatprep.subr.mxu0 %v1724_v63 }
 0x1c9   :  { %1005 = vmatpush1.msra.mxu1 %v1697_v55  ;;  %900 = vmatprep.mubr.f32.mxu1 %v1536_v1  ;;  %v566_v45 = vpop.f32.mrf.mxu0 }
 0x1ca   :  { %1006 = vmatprep.subr.mxu1 %v1700_v56  ;;  %974 = vmatprep.mubr.f32.mxu0 %v1536_v1  ;;  %v1866_v56 = vld [vmem:[%s1940_s7 + $0x1] ss:$0 sm:$0xff] }
 0x1cb   :  { %1007 = vmatpush1.msra.mxu1 %v1703_v57  ;;  %1108 = vmatpush1.msra.mxu0 %v1731_v2 }
 0x1cc   :  { %1008 = vmatprep.subr.mxu1 %v1706_v58  ;;  %1109 = vmatprep.subr.mxu0 %v1738_v4 }
 0x1cd   :  { %1009 = vmatpush1.msra.mxu1 %v1711_v60  ;;  %1110 = vmatpush1.msra.mxu0 %v1744_v6 }
 0x1ce   :  { %1010 = vmatprep.subr.mxu1 %v1715_v61  ;;  %1111 = vmatprep.subr.mxu0 %v1750_v8 }
 0x1cf   :  { %1011 = vmatpush1.msra.mxu1 %v1720_v62  ;;  %1112 = vmatpush1.msra.mxu0 %v1756_v10 }
 0x1d0   :  { %1113 = vmatprep.subr.mxu0 %v1762_v12  ;;  %1178 = vmatprep.subr.mxu1 %v1726_v0 }
 0x1d1   :  { %1114 = vmatpush1.msra.mxu0 %v1769_v14 }
 0x27e   :  { %v703_v48 = vpop.f32.mrf.mxu1  ;;  %v774_v49 = vpop.f32.mrf.mxu0 }
 0x27f   :  { %v778_v50 = vadd.f32 %v703_v48, %v491_v46 }
 0x280   :  { %v705_v51 = vpop.f32.mrf.mxu1  ;;  %v776_v52 = vpop.f32.mrf.mxu0 }
 0x281   :  { %v785_v53 = vadd.f32 %v1860_v47, %v778_v50  ;;  %v792_v55 = vadd.f32 %v705_v51, %v564_v43 }
 0x283   :  { %v1321_v54 = vmul.f32 -1.442695, %v785_v53  ;;  %v799_v57 = vadd.f32 %v1866_v56, %v792_v55 }
 0x285   :  { %1365 = vpow2.f32 %v1321_v54  ;;  %v1323_v2 = vmul.f32 -1.442695, %v799_v57 }
 0x287   :  { %v896_v58 = vpop.f32.mrf.mxu1  ;;  %v971_v60 = vpop.f32.mrf.mxu0 }
 0x288   :  { %v1055_v61 = vadd.f32 %v896_v58, %v1784_v20  ;;  %v1072_v31 = vadd.f32 %v1808_v18, %v971_v60 }
 0x289   :  { %v898_v62 = vpop.f32.mrf.mxu1  ;;  %v973_v63 = vpop.f32.mrf.mxu0 }
 0x28a   :  { %v1056_v0 = vadd.f32 %v1796_v26, %v1055_v61  ;;  %v1063_v6 = vadd.f32 %v898_v62, %v1791_v24  ;;  %v1876_v26 = vld [vmem:[%s1940_s7 + $0x3] ss:$0 sm:$0xff]  ;;  %v1881_v24 = vld [vmem:[%s1940_s7 + $0x2] ss:$0 sm:$0xff] }
 0x28b   :  { %v812_v25 = vadd.f32 %v1881_v24, %v774_v49 }
 0x28c   :  { %v1332_v4 = vmul.f32 -1.442695, %v1056_v0  ;;  %v1064_v8 = vadd.f32 %v1802_v34, %v1063_v6  ;;  %v819_v34 = vadd.f32 %v1876_v26, %v566_v45 }
 0x28e   :  { %1367 = vpow2.f32 %v1332_v4  ;;  %v1333_v14 = vmul.f32 -1.442695, %v1064_v8 }
 0x28f   :  { %1369 = vpow2.f32 %v1323_v2 }
 0x292   :  { %v1366_v10 = vpop.eup %1365 }
 0x293   :  { %v789_v12 = vadd.f32 1.0, %v1366_v10 }
 0x295   :  { %1371 = vrcp.f32 %v789_v12 }
 0x296   :  { %1373 = vpow2.f32 %v1333_v14 }
 0x29b   :  { %v1368_v17 = vpop.eup %1367 }
 0x29c   :  { %v1370_v21 = vpop.eup %1369  ;;  %v1060_v20 = vadd.f32 1.0, %v1368_v17 }
 0x29d   :  { %v803_v33 = vadd.f32 1.0, %v1370_v21 }
 0x29e   :  { %1375 = vrcp.f32 %v1060_v20 }
 0x29f   :  { %1377 = vrcp.f32 %v803_v33 }
 0x2a2   :  { %v1372_v16 = vpop.eup %1371 }
 0x2a3   :  { %v820_v27 = vmul.f32 %v1372_v16, %v819_v34  ;;  %v1374_v28 = vpop.eup %1373 }
 0x2a4   :  { %v1068_v30 = vadd.f32 1.0, %v1374_v28 }
 0x2a5   :  { %v821_v29 = vadd.f32 %v820_v27, %v812_v25 }
 0x2a7   :  { %1379 = vtanh.f32 %v821_v29 }
 0x2a8   :  { %1381 = vrcp.f32 %v1068_v30 }
 0x2ab   :  { %v1376_v32 = vpop.eup %1375 }
 0x2ac   :  { %v1073_v35 = vmul.f32 %v1376_v32, %v1072_v31  ;;  %v1378_v39 = vpop.eup %1377 }
 0x2ad   :  { %v823_v44 = vsub.f32 1.0, %v1378_v39  ;;  %v825_v40 = vmul.f32 %v1378_v39, %v1709_v59 }
 0x2ae   :  { %v1074_v37 = vadd.f32 %v1073_v35, %v1789_v23 }
 0x2b0   :  { %1383 = vtanh.f32 %v1074_v37 }
 0x2b4   :  { %v1380_v36 = vpop.eup %1379 }
 0x2b5   :  { %v824_v38 = vmul.f32 %v1380_v36, %v823_v44  ;;  %v1382_v42 = vpop.eup %1381 }
 0x2b6   :  { %v1076_v23 = vsub.f32 1.0, %v1382_v42  ;;  %v1078_v43 = vmul.f32 %v1382_v42, %v1812_v22 }
 0x2b7   :  { %v1888_v41 = vadd.f32 %v825_v40, %v824_v38 }
 0x2b9   :  { %1327 = vmatmul.mubr.msk.f32.gmra.mxu1 %vm337_vm3, %v1888_v41  ;;  %1329 = vmatmul.mubr.msk.f32.gmra.mxu0 %vm337_vm3, %v1888_v41 }
 0x2ba   :  { %1044 = vmatprep.mubr.f32.mxu1 %v1536_v1  ;;  %1147 = vmatprep.mubr.f32.mxu0 %v1536_v1 }
 0x2bd   :  { %v1384_v18 = vpop.eup %1383  ;;  %1330 = vmatmul.mubr.msk.f32.vlgmr.msra.gmra.mxu1 %vm337_vm3, %v1812_v22 }
 0x2be   :  { %1179 = vmatpush1.msra.mxu1 %v1733_v3  ;;  %1048 = vmatprep.mubr.f32.mxu1 %v1536_v1  ;;  %v1077_v59 = vmul.f32 %v1384_v18, %v1076_v23 }
 0x2bf   :  { %1180 = vmatprep.subr.mxu1 %v1740_v5 }
 0x2c0   :  { %v1079_v45 = vadd.f32 %v1078_v43, %v1077_v59  ;;  %1181 = vmatpush1.msra.mxu1 %v1746_v7 }
 0x2c1   :  { %1331 = vmatmul.mubr.msk.f32.gmra.mxu1 %vm337_vm3, %v1888_v41  ;;  %1182 = vmatprep.subr.mxu1 %v1752_v9 }
 0x2c2   :  { %1334 = vmatmul.mubr.msk.f32.vlgmr.msra.gmra.mxu0 %vm337_vm3, %v1079_v45  ;;  %1260 = vst.msk [vmem:[#allocation11] sm:$0xff] %vm337_vm3, %v1079_v45  ;;  %1183 = vmatpush1.msra.mxu1 %v1758_v11 }
 0x2c3   :  { %1184 = vmatprep.subr.mxu1 %v1764_v13  ;;  %1218 = vmatprep.mubr.f32.mxu1 %v1536_v1 }
 0x2c4   :  { %1185 = vmatpush1.msra.mxu1 %v1771_v15  ;;  %v1338_v15 = vld [vmem:[%s1941_s8] ss:$0 sm:$0xff] }
 0x2c5   :  { %1335 = vmatmul.mubr.msk.f32.vlgmr.msra.gmra.mxu1 %vm337_vm3, %v1079_v45 }
 0x379   :  { %v902_v3 = vpop.f32.mrf.mxu1  ;;  %v976_v5 = vpop.f32.mrf.mxu0 }
 0x37b   :  { %v903_v7 = vpop.f32.mrf.mxu1  ;;  %v977_v9 = vpop.f32.mrf.mxu0 }
 0x37d   :  { %v1046_v22 = vpop.f32.mrf.mxu1 }
 0x37f   :  { %v1047_v46 = vpop.f32.mrf.mxu1 }
 0x381   :  { %v1050_v48 = vpop.f32.mrf.mxu1 }
 0x382   :  { %v1149_v49 = vpop.f32.mrf.mxu0 }
 0x383   :  { %v1225_v50 = vadd.f32 %v1149_v49, %v977_v9  ;;  %v1052_v51 = vpop.f32.mrf.mxu1 }
 0x384   :  { %v1151_v52 = vpop.f32.mrf.mxu0 }
 0x385   :  { %v1226_v11 = vadd.f32 %v1860_v47, %v1225_v50  ;;  %v1220_v13 = vpop.f32.mrf.mxu1  ;;  %v1233_v1 = vadd.f32 %v1151_v52, %v1050_v48 }
 0x387   :  { %v1336_v53 = vmul.f32 -1.442695, %v1226_v11  ;;  %v1222_v54 = vpop.f32.mrf.mxu1  ;;  %v1234_v58 = vadd.f32 %v1866_v56, %v1233_v1 }
 0x388   :  { %v1250_v55 = vadd.f32 %v1222_v54, %v1782_v19 }
 0x389   :  { %1385 = vpow2.f32 %v1336_v53 }
 0x38a   :  { %v1258_v57 = vadd.f32 %v1338_v15, %v1250_v55 }
 0x38c   :  { %1259 = vst.msk [vmem:[#allocation10] sm:$0xff] %vm110_vm2, %v1258_v57 }
 0x38d   :  { %1486 = shalt.err (!%p1483_p10)
}
 0x38e   :  { %1271 = dma.vmem_to_hbm [thread:$0]  %s1269_s4, 128, %s1942_s9, [#allocation4]   ;;  %v1337_v47 = vmul.f32 -1.442695, %v1234_v58  ;;  %v1242_v62 = vadd.f32 %v1876_v26, %v1052_v51  ;;  %v1241_v2 = vadd.f32 %v1881_v24, %v1220_v13 }
 0x38f   :  { %s1539_s9 = smov [#allocation11]  }
 0x390   :  { %1387 = vpow2.f32 %v1337_v47  ;;  %s1277_s21 = sshll.u32 %s1539_s9, 4  ;;  %s1278_s21 = int_to_ptr.vmem [resolvable:$true] %s1277_s21 }
 0x391   :  { %s1495_s5 = scalar_lea.vmem %s1278_s21, 256  ;;  %p1500_p12 = scmp.lt.s32.totalorder %s1278_s21, %s1278_s21 }
 0x392   :  { %p1496_p11 = scmp.ne.s32.totalorder %s1278_s21, %s1495_s5  ;;  %p1501_p13 = scmp.lt.s32.totalorder %s1495_s5, %s1495_s5 }
 0x394   :  { %p1502_p0 = por %p1501_p13, %p1500_p12 }
 0x396   :  { %v1386_v19 = vpop.eup %1385  ;;  %p1503_p1 = pnand %p1502_p0, %p1496_p11 }
 0x397   :  { %v1230_v60 = vadd.f32 1.0, %v1386_v19 }
 0x399   :  { %1389 = vrcp.f32 %v1230_v60 }
 0x39d   :  { %v1388_v61 = vpop.eup %1387 }
 0x39e   :  { %v1238_v56 = vadd.f32 1.0, %v1388_v61 }
 0x3a0   :  { %1391 = vrcp.f32 %v1238_v56 }
 0x3a6   :  { %v1390_v63 = vpop.eup %1389 }
 0x3a7   :  { %v1243_v0 = vmul.f32 %v1390_v63, %v1242_v62 }
 0x3a9   :  { %v1244_v4 = vadd.f32 %v1243_v0, %v1241_v2 }
 0x3ab   :  { %1393 = vtanh.f32 %v1244_v4 }
 0x3ad   :  { %v1392_v6 = vpop.eup %1391 }
 0x3ae   :  { %v1246_v8 = vsub.f32 1.0, %v1392_v6  ;;  %v1248_v14 = vmul.f32 %v1392_v6, %v1888_v41 }
 0x3b8   :  { %v1394_v10 = vpop.eup %1393 }
 0x3b9   :  { %v1247_v12 = vmul.f32 %v1394_v10, %v1246_v8 }
 0x3bb   :  { %v1249_v17 = vadd.f32 %v1248_v14, %v1247_v12 }
 0x3bd   :  { %1261 = vst.msk [vmem:[#allocation11 + $0x8] sm:$0xff] %vm337_vm3, %v1249_v17 }
 0x3be   :  { %1506 = shalt.err (!%p1503_p1)
}
 0x3bf   :  { %1283 = dma.vmem_to_hbm [thread:$0]  %s1278_s21, 256, %s1943_s10, [#allocation12], %s1529_s23, %s1529_s23, %s1530_s24  }
 0x3c0   :  { %1521 = dma.done.wait [#allocation4], 128  }
 0x3c1   :  { %1522 = vsyncadd [#allocation4], 4294967168 }
 0x3c2   :  { %1523 = dma.done.wait [#allocation12], 256  }
 0x3c3   :  { %1524 = vsyncadd [#allocation12], 4294967040 }
 0x3c4   :  { %1290 = vsyncpa [#allocation3], 1 }
 0x3c5   :  { %1291 = vsyncpa [#allocation6], 1 }
 0x3c6   :  { %1292 = vsyncpa [#allocation9], 1 }
 0x3c7   :  { %1293 = vsyncpa [#allocation4], 1 }
 0x3c8   :  { %1294 = vsyncpa [#allocation12], 1 }

</bundles_post_ra>
